<compile_context>
chip_gen: v6e
topology: v6e:2x2x1
jax: 0.10.0
libtpu: 0.0.40
codegen_flags: <defaults>
</compile_context>

<pallas_src>
import functools

import jax
import jax.numpy as jnp
from jax import lax
from jax.experimental import pallas as pl
from jax.experimental.pallas import tpu as pltpu

LN_EPS = 1e-5  # PyTorch nn.LayerNorm default


def _round_up(n, m):
    return (n + m - 1) // m * m


def srmt_kernel(x_ref, w_ref, vec_ref, out_ref, *,
                input_size, hidden_size, output_size, group, n_small):
    I, H, O, G = input_size, hidden_size, output_size, group
    GI, GH = G * I, G * H  # both 128 by construction

    x = x_ref[...]                                       # [TB, GI] f32 (G batch rows / packed row)

    # Static, tile-aligned row slices of the bf16 weight slab -> zero-cost views.
    r1, r2, r3, r4 = GI, GI + GH, GI + 2 * GH, GI + 3 * GH
    w1 = w_ref[0:GI, :]                                  # block-diag(w1  x G)      [GI, GH]
    w2 = w_ref[r1:r1 + GH, :]                            # block-diag(w2  x G)      [GH, GH]
    wh1 = w_ref[r2:r2 + GH, :]                           # block-diag([pw1|vw1])    [GH, GH]
    wh2 = w_ref[r3:r3 + GH, :]                           # block-diag(head2)        [GH, G*n_small]
    seg = w_ref[r4:r4 + GH, :]                           # block-diag(ones(H,H))    [GH, GH]

    vecs = vec_ref[...]                                  # [8, 128] f32
    b1, g1, be1 = vecs[0:1, :], vecs[1:2, :], vecs[2:3, :]
    b2, g2, be2 = vecs[3:4, :], vecs[4:5, :], vecs[5:6, :]
    hb1, hb2 = vecs[6:7, :], vecs[7:8, :]

    inv_h = jnp.float32(1.0 / H)

    def seg_layernorm(h, gamma, beta):
        # Per-H-lane-group LayerNorm; segmented sums ride the MXU (it has slack), two-pass
        # (mean, then centered squares) so there is no E[x^2]-mu^2 cancellation.
        s = jnp.dot(h.astype(jnp.bfloat16), seg, preferred_element_type=jnp.float32)
        mu = s * inv_h
        c = h - mu
        s2 = jnp.dot((c * c).astype(jnp.bfloat16), seg, preferred_element_type=jnp.float32)
        var = s2 * inv_h
        return c * lax.rsqrt(var + LN_EPS) * gamma + beta

    # ---- feature extractor: (Linear -> ReLU -> LayerNorm) x 2 ----
    h = jnp.dot(x.astype(jnp.bfloat16), w1, preferred_element_type=jnp.float32) + b1
    h = seg_layernorm(jnp.maximum(h, 0.0), g1, be1)
    h = jnp.dot(h.astype(jnp.bfloat16), w2, preferred_element_type=jnp.float32) + b2
    h = seg_layernorm(jnp.maximum(h, 0.0), g2, be2)

    # ---- fused policy + value heads ----
    p = jnp.maximum(
        jnp.dot(h.astype(jnp.bfloat16), wh1, preferred_element_type=jnp.float32) + hb1, 0.0)
    z = jnp.dot(p.astype(jnp.bfloat16), wh2, preferred_element_type=jnp.float32) + hb2

    # tanh on the policy columns (first O lanes of each n_small-wide group), identity on the
    # value column; pad columns are exactly 0.  n_small is a power of two -> bitwise mask.
    col = lax.broadcasted_iota(jnp.int32, z.shape, 1) & (n_small - 1)
    out_ref[...] = jnp.where(col < O, jnp.tanh(z), z)


def pack_params(params, input_size, hidden_size, output_size):
    """Pack the 16 natural parameters into 2 slabs (bf16 weights + f32 vectors), done once."""
    I, H, O = input_size, hidden_size, output_size
    half = H // 2
    # TODO(synk): general sizes (hidden_size > 128, or output_size + 1 > hidden_size) would
    # need an unpacked / multi-group layout; not required for this demo configuration.
    assert 128 % H == 0 and 128 % I == 0, "lane-packing demo assumes I and H divide 128"
    G = 128 // H
    assert G * I == 128, "lane-packing assumes the input rows reinterpret to exactly 128 lanes"
    n_small = 128 // G                     # per-row output width (power of two)
    assert O + 1 <= n_small, "fused head output must fit one lane group"
    GI, GH, GO = G * I, G * H, G * n_small

    # per-row weight matrices ([in, out] layout)
    wh1 = jnp.concatenate([params["pw1"], params["vw1"]], axis=1)        # [H, H]
    wh2 = jnp.zeros((H, n_small), jnp.float32)
    wh2 = wh2.at[:half, :O].set(params["pw2"])
    wh2 = wh2.at[half:, O:O + 1].set(params["vw2"])

    def blkdiag(m, out_cols):
        rows, cols = m.shape
        big = jnp.zeros((G * rows, out_cols), jnp.float32)
        for g in range(G):
            big = big.at[g * rows:(g + 1) * rows, g * cols:(g + 1) * cols].set(m)
        return big

    w_slab = jnp.concatenate([
        blkdiag(params["w1"], GH),                    # [GI, GH]
        blkdiag(params["w2"], GH),                    # [GH, GH]
        blkdiag(wh1, GH),                             # [GH, GH]
        blkdiag(wh2, GO),                             # [GH, GO]
        blkdiag(jnp.ones((H, H), jnp.float32), GH),   # segmented-sum ones matrix
    ], axis=0).astype(jnp.bfloat16)                   # [GI + 4*GH, 128] bf16

    def tile_vec(v, width):
        per = width // G
        row = jnp.zeros((per,), jnp.float32).at[:v.shape[1]].set(v[0])
        return jnp.tile(row, G)

    hb1 = jnp.concatenate([params["pb1"], params["vb1"]], axis=1)        # [1, H]
    hb2 = jnp.concatenate([params["pb2"], params["vb2"]], axis=1)        # [1, O+1]
    vec_slab = jnp.stack([
        tile_vec(params["b1"], GH), tile_vec(params["g1"], GH), tile_vec(params["be1"], GH),
        tile_vec(params["b2"], GH), tile_vec(params["g2"], GH), tile_vec(params["be2"], GH),
        tile_vec(hb1, GH), tile_vec(hb2, GO),
    ], axis=0)                                        # [8, 128] f32

    return dict(w=w_slab, vec=vec_slab,
                input_size=I, hidden_size=H, G=G, n_small=n_small)


def srmt_forward(x, packed, output_size):
    """x: [B, input_size] f32 -> (action [B, output_size], value [B, 1])."""
    B, I = x.shape
    w, vec = packed["w"], packed["vec"]
    H, G, n_small = packed["hidden_size"], packed["G"], packed["n_small"]
    O = output_size
    lanes_in, lanes_out = G * I, G * n_small          # both 128

    # Batch tiling on packed rows: bounded block size (VMEM-safe for any B), padded tail for
    # ragged B, and >= 2 grid steps once there is enough work (v7x megacore).
    rows = pl.cdiv(B, G)
    if rows >= 16:
        TB = min(1024, _round_up(pl.cdiv(rows, 2), 8))
    else:
        TB = _round_up(rows, 8)
    rows_pad = _round_up(rows, TB)
    grid = (rows_pad // TB,)

    B_pad = rows_pad * G
    if B_pad != B:
        x = jnp.pad(x, ((0, B_pad - B), (0, 0)))
    x_packed = x.reshape(rows_pad, lanes_in)          # free reinterpretation (row-major)

    kernel = functools.partial(
        srmt_kernel, input_size=I, hidden_size=H, output_size=O, group=G, n_small=n_small)

    out = pl.pallas_call(
        kernel,
        out_shape=jax.ShapeDtypeStruct((rows_pad, lanes_out), jnp.float32),
        grid=grid,
        in_specs=[
            pl.BlockSpec((TB, lanes_in), lambda i: (i, 0)),   # activations: tiled over batch
            pl.BlockSpec(w.shape, lambda i: (0, 0)),          # bf16 weight slab: resident
            pl.BlockSpec(vec.shape, lambda i: (0, 0)),        # bias / LN slab: resident
        ],
        out_specs=pl.BlockSpec((TB, lanes_out), lambda i: (i, 0)),
        compiler_params=pltpu.CompilerParams(
            dimension_semantics=("parallel",)),
    )(x_packed, w, vec)

    out_rows = out.reshape(B_pad, n_small)[:B]        # free reinterpretation back to per-row
    action = out_rows[:, :O]
    value = out_rows[:, O:O + 1]
    return action, value


def init_params(key, input_size, hidden_size, output_size):
    """Deterministic synthetic init (no checkpoint loading), PyTorch-ish uniform."""
    half = hidden_size // 2
    ks = jax.random.split(key, 6)

    def lin(k, fan_in, fan_out):
        bound = 1.0 / jnp.sqrt(jnp.float32(fan_in))
        kw, kb = jax.random.split(k)
        w = jax.random.uniform(kw, (fan_in, fan_out), jnp.float32, -bound, bound)
        b = jax.random.uniform(kb, (1, fan_out), jnp.float32, -bound, bound)
        return w, b

    w1, b1 = lin(ks[0], input_size, hidden_size)
    w2, b2 = lin(ks[1], hidden_size, hidden_size)
    pw1, pb1 = lin(ks[2], hidden_size, half)
    pw2, pb2 = lin(ks[3], half, output_size)
    vw1, vb1 = lin(ks[4], hidden_size, half)
    vw2, vb2 = lin(ks[5], half, 1)

    return dict(
        w1=w1, b1=b1,
        g1=jnp.ones((1, hidden_size), jnp.float32),
        be1=jnp.zeros((1, hidden_size), jnp.float32),
        w2=w2, b2=b2,
        g2=jnp.ones((1, hidden_size), jnp.float32),
        be2=jnp.zeros((1, hidden_size), jnp.float32),
        pw1=pw1, pb1=pb1, pw2=pw2, pb2=pb2,
        vw1=vw1, vb1=vb1, vw2=vw2, vb2=vb2,
    )


def srmt_reference(x, p):
    """Pure-JAX f32 reference (two-pass LayerNorm, HIGHEST matmul precision)."""
    hp = lax.Precision.HIGHEST

    def ln(h, g, b):
        mu = jnp.mean(h, axis=-1, keepdims=True)
        var = jnp.mean((h - mu) ** 2, axis=-1, keepdims=True)
        return (h - mu) * lax.rsqrt(var + LN_EPS) * g + b

    h = ln(jnp.maximum(jnp.dot(x, p["w1"], precision=hp) + p["b1"], 0.0), p["g1"], p["be1"])
    h = ln(jnp.maximum(jnp.dot(h, p["w2"], precision=hp) + p["b2"], 0.0), p["g2"], p["be2"])
    a = jnp.tanh(jnp.dot(jnp.maximum(jnp.dot(h, p["pw1"], precision=hp) + p["pb1"], 0.0),
                         p["pw2"], precision=hp) + p["pb2"])
    v = jnp.dot(jnp.maximum(jnp.dot(h, p["vw1"], precision=hp) + p["vb1"], 0.0),
                p["vw2"], precision=hp) + p["vb2"]
    return a, v


if __name__ == "__main__":
    input_size, hidden_size, output_size = 32, 32, 16

    key = jax.random.PRNGKey(0)
    k_params, k_x1, k_x2 = jax.random.split(key, 3)
    params = init_params(k_params, input_size, hidden_size, output_size)
    packed = pack_params(params, input_size, hidden_size, output_size)

    # Two batch sizes: tiny (single grid step) and ragged (padded tail, 2 grid steps).
    for k_x, batch in ((k_x1, 8), (k_x2, 100)):
        x = jax.random.normal(k_x, (batch, input_size), jnp.float32)
        action, value = srmt_forward(x, packed, output_size)
        jax.block_until_ready((action, value))

        a_ref, v_ref = srmt_reference(x, params)
        assert action.shape == (batch, output_size) and value.shape == (batch, 1)
        # bf16 MXU inputs -> looser tolerance than the f32 reference (per perf review).
        assert jnp.allclose(action, a_ref, atol=2e-2), "policy output mismatch"
        assert jnp.allclose(value, v_ref, atol=2e-2), "value output mismatch"

    print("KERNEL_OK")
</pallas_src>

<mosaic_0001>
module attributes {stable_mosaic.version = 11 : i64} {
  func.func @srmt_kernel(%arg0: i32, %arg1: memref<8x128xf32, #tpu.memory_space<vmem>>, %arg2: memref<640x128xbf16, #tpu.memory_space<vmem>>, %arg3: memref<8x128xf32, #tpu.memory_space<vmem>>, %arg4: memref<8x128xf32, #tpu.memory_space<vmem>>) attributes {dimension_semantics = [#tpu.dimension_semantics<parallel>], iteration_bounds = array<i64: 1>, scalar_prefetch = 0 : i64, scratch_operands = 0 : i64, tpu.core_type = #tpu.core_type<tc>, window_params = [{transform_indices = @transform_0, window_bounds = array<i64: 8, 128>}, {pipeline_mode = #tpu.pipeline_mode<synchronous>, transform_indices = @transform_1, window_bounds = array<i64: 640, 128>}, {pipeline_mode = #tpu.pipeline_mode<synchronous>, transform_indices = @transform_2, window_bounds = array<i64: 8, 128>}, {transform_indices = @transform_3, window_bounds = array<i64: 8, 128>}]} {
    %c0 = arith.constant 0 : index
    %c0_0 = arith.constant 0 : index
    %0 = vector.load %arg1[%c0, %c0_0] : memref<8x128xf32, #tpu.memory_space<vmem>>, vector<8x128xf32>
    %c0_1 = arith.constant 0 : index
    %c0_2 = arith.constant 0 : index
    %1 = vector.load %arg2[%c0_1, %c0_2] : memref<640x128xbf16, #tpu.memory_space<vmem>>, vector<128x128xbf16>
    %c128 = arith.constant 128 : index
    %c0_3 = arith.constant 0 : index
    %2 = vector.load %arg2[%c128, %c0_3] : memref<640x128xbf16, #tpu.memory_space<vmem>>, vector<128x128xbf16>
    %c256 = arith.constant 256 : index
    %c0_4 = arith.constant 0 : index
    %3 = vector.load %arg2[%c256, %c0_4] : memref<640x128xbf16, #tpu.memory_space<vmem>>, vector<128x128xbf16>
    %c384 = arith.constant 384 : index
    %c0_5 = arith.constant 0 : index
    %4 = vector.load %arg2[%c384, %c0_5] : memref<640x128xbf16, #tpu.memory_space<vmem>>, vector<128x128xbf16>
    %c512 = arith.constant 512 : index
    %c0_6 = arith.constant 0 : index
    %5 = vector.load %arg2[%c512, %c0_6] : memref<640x128xbf16, #tpu.memory_space<vmem>>, vector<128x128xbf16>
    %c0_7 = arith.constant 0 : index
    %c0_8 = arith.constant 0 : index
    %6 = vector.load %arg3[%c0_7, %c0_8] : memref<8x128xf32, #tpu.memory_space<vmem>>, vector<8x128xf32>
    %7 = vector.extract_strided_slice %6 {offsets = [0, 0], sizes = [1, 128], strides = [1, 1]} : vector<8x128xf32> to vector<1x128xf32>
    %8 = vector.extract_strided_slice %6 {offsets = [1, 0], sizes = [1, 128], strides = [1, 1]} : vector<8x128xf32> to vector<1x128xf32>
    %9 = vector.extract_strided_slice %6 {offsets = [2, 0], sizes = [1, 128], strides = [1, 1]} : vector<8x128xf32> to vector<1x128xf32>
    %10 = vector.extract_strided_slice %6 {offsets = [3, 0], sizes = [1, 128], strides = [1, 1]} : vector<8x128xf32> to vector<1x128xf32>
    %11 = vector.extract_strided_slice %6 {offsets = [4, 0], sizes = [1, 128], strides = [1, 1]} : vector<8x128xf32> to vector<1x128xf32>
    %12 = vector.extract_strided_slice %6 {offsets = [5, 0], sizes = [1, 128], strides = [1, 1]} : vector<8x128xf32> to vector<1x128xf32>
    %13 = vector.extract_strided_slice %6 {offsets = [6, 0], sizes = [1, 128], strides = [1, 1]} : vector<8x128xf32> to vector<1x128xf32>
    %14 = vector.extract_strided_slice %6 {offsets = [7, 0], sizes = [1, 128], strides = [1, 1]} : vector<8x128xf32> to vector<1x128xf32>
    %15 = arith.truncf %0 : vector<8x128xf32> to vector<8x128xbf16>
    %cst = arith.constant dense<0.000000e+00> : vector<8x128xf32>
    %16 = tpu.matmul %15, %1, %cst {dimension_numbers = #tpu.dot_dimension_numbers<[1], [0], [0], [1], [0, 0, 1, 1], [], []>} : vector<8x128xbf16>, vector<128x128xbf16>, vector<8x128xf32> -> vector<8x128xf32>
    %17 = vector.broadcast %7 : vector<1x128xf32> to vector<8x128xf32>
    %18 = arith.addf %16, %17 : vector<8x128xf32>
    %cst_9 = arith.constant 0.000000e+00 : f32
    %19 = vector.broadcast %cst_9 : f32 to vector<8x128xf32>
    %20 = arith.maximumf %18, %19 : vector<8x128xf32>
    %21 = arith.truncf %20 : vector<8x128xf32> to vector<8x128xbf16>
    %cst_10 = arith.constant dense<0.000000e+00> : vector<8x128xf32>
    %22 = tpu.matmul %21, %5, %cst_10 {dimension_numbers = #tpu.dot_dimension_numbers<[1], [0], [0], [1], [0, 0, 1, 1], [], []>} : vector<8x128xbf16>, vector<128x128xbf16>, vector<8x128xf32> -> vector<8x128xf32>
    %cst_11 = arith.constant 3.125000e-02 : f32
    %23 = vector.broadcast %cst_11 : f32 to vector<8x128xf32>
    %24 = arith.mulf %22, %23 : vector<8x128xf32>
    %25 = arith.subf %20, %24 : vector<8x128xf32>
    %26 = arith.mulf %25, %25 : vector<8x128xf32>
    %27 = arith.truncf %26 : vector<8x128xf32> to vector<8x128xbf16>
    %cst_12 = arith.constant dense<0.000000e+00> : vector<8x128xf32>
    %28 = tpu.matmul %27, %5, %cst_12 {dimension_numbers = #tpu.dot_dimension_numbers<[1], [0], [0], [1], [0, 0, 1, 1], [], []>} : vector<8x128xbf16>, vector<128x128xbf16>, vector<8x128xf32> -> vector<8x128xf32>
    %cst_13 = arith.constant 3.125000e-02 : f32
    %29 = vector.broadcast %cst_13 : f32 to vector<8x128xf32>
    %30 = arith.mulf %28, %29 : vector<8x128xf32>
    %cst_14 = arith.constant 9.99999974E-6 : f32
    %31 = vector.broadcast %cst_14 : f32 to vector<8x128xf32>
    %32 = arith.addf %30, %31 : vector<8x128xf32>
    %33 = math.rsqrt %32 : vector<8x128xf32>
    %34 = arith.mulf %25, %33 : vector<8x128xf32>
    %35 = vector.broadcast %8 : vector<1x128xf32> to vector<8x128xf32>
    %36 = arith.mulf %34, %35 : vector<8x128xf32>
    %37 = vector.broadcast %9 : vector<1x128xf32> to vector<8x128xf32>
    %38 = arith.addf %36, %37 : vector<8x128xf32>
    %39 = arith.truncf %38 : vector<8x128xf32> to vector<8x128xbf16>
    %cst_15 = arith.constant dense<0.000000e+00> : vector<8x128xf32>
    %40 = tpu.matmul %39, %2, %cst_15 {dimension_numbers = #tpu.dot_dimension_numbers<[1], [0], [0], [1], [0, 0, 1, 1], [], []>} : vector<8x128xbf16>, vector<128x128xbf16>, vector<8x128xf32> -> vector<8x128xf32>
    %41 = vector.broadcast %10 : vector<1x128xf32> to vector<8x128xf32>
    %42 = arith.addf %40, %41 : vector<8x128xf32>
    %cst_16 = arith.constant 0.000000e+00 : f32
    %43 = vector.broadcast %cst_16 : f32 to vector<8x128xf32>
    %44 = arith.maximumf %42, %43 : vector<8x128xf32>
    %45 = arith.truncf %44 : vector<8x128xf32> to vector<8x128xbf16>
    %cst_17 = arith.constant dense<0.000000e+00> : vector<8x128xf32>
    %46 = tpu.matmul %45, %5, %cst_17 {dimension_numbers = #tpu.dot_dimension_numbers<[1], [0], [0], [1], [0, 0, 1, 1], [], []>} : vector<8x128xbf16>, vector<128x128xbf16>, vector<8x128xf32> -> vector<8x128xf32>
    %cst_18 = arith.constant 3.125000e-02 : f32
    %47 = vector.broadcast %cst_18 : f32 to vector<8x128xf32>
    %48 = arith.mulf %46, %47 : vector<8x128xf32>
    %49 = arith.subf %44, %48 : vector<8x128xf32>
    %50 = arith.mulf %49, %49 : vector<8x128xf32>
    %51 = arith.truncf %50 : vector<8x128xf32> to vector<8x128xbf16>
    %cst_19 = arith.constant dense<0.000000e+00> : vector<8x128xf32>
    %52 = tpu.matmul %51, %5, %cst_19 {dimension_numbers = #tpu.dot_dimension_numbers<[1], [0], [0], [1], [0, 0, 1, 1], [], []>} : vector<8x128xbf16>, vector<128x128xbf16>, vector<8x128xf32> -> vector<8x128xf32>
    %cst_20 = arith.constant 3.125000e-02 : f32
    %53 = vector.broadcast %cst_20 : f32 to vector<8x128xf32>
    %54 = arith.mulf %52, %53 : vector<8x128xf32>
    %cst_21 = arith.constant 9.99999974E-6 : f32
    %55 = vector.broadcast %cst_21 : f32 to vector<8x128xf32>
    %56 = arith.addf %54, %55 : vector<8x128xf32>
    %57 = math.rsqrt %56 : vector<8x128xf32>
    %58 = arith.mulf %49, %57 : vector<8x128xf32>
    %59 = vector.broadcast %11 : vector<1x128xf32> to vector<8x128xf32>
    %60 = arith.mulf %58, %59 : vector<8x128xf32>
    %61 = vector.broadcast %12 : vector<1x128xf32> to vector<8x128xf32>
    %62 = arith.addf %60, %61 : vector<8x128xf32>
    %63 = arith.truncf %62 : vector<8x128xf32> to vector<8x128xbf16>
    %cst_22 = arith.constant dense<0.000000e+00> : vector<8x128xf32>
    %64 = tpu.matmul %63, %3, %cst_22 {dimension_numbers = #tpu.dot_dimension_numbers<[1], [0], [0], [1], [0, 0, 1, 1], [], []>} : vector<8x128xbf16>, vector<128x128xbf16>, vector<8x128xf32> -> vector<8x128xf32>
    %65 = vector.broadcast %13 : vector<1x128xf32> to vector<8x128xf32>
    %66 = arith.addf %64, %65 : vector<8x128xf32>
    %cst_23 = arith.constant 0.000000e+00 : f32
    %67 = vector.broadcast %cst_23 : f32 to vector<8x128xf32>
    %68 = arith.maximumf %66, %67 : vector<8x128xf32>
    %69 = arith.truncf %68 : vector<8x128xf32> to vector<8x128xbf16>
    %cst_24 = arith.constant dense<0.000000e+00> : vector<8x128xf32>
    %70 = tpu.matmul %69, %4, %cst_24 {dimension_numbers = #tpu.dot_dimension_numbers<[1], [0], [0], [1], [0, 0, 1, 1], [], []>} : vector<8x128xbf16>, vector<128x128xbf16>, vector<8x128xf32> -> vector<8x128xf32>
    %71 = vector.broadcast %14 : vector<1x128xf32> to vector<8x128xf32>
    %72 = arith.addf %70, %71 : vector<8x128xf32>
    %73 = tpu.iota {dimensions = array<i32: 1>} : vector<8x128xi32>
    %c31_i32 = arith.constant 31 : i32
    %74 = vector.broadcast %c31_i32 : i32 to vector<8x128xi32>
    %75 = arith.andi %73, %74 : vector<8x128xi32>
    %c16_i32 = arith.constant 16 : i32
    %76 = vector.broadcast %c16_i32 : i32 to vector<8x128xi32>
    %77 = arith.cmpi slt, %75, %76 : vector<8x128xi32>
    %78 = math.tanh %72 : vector<8x128xf32>
    %79 = arith.select %77, %78, %72 : vector<8x128xi1>, vector<8x128xf32>
    %c0_25 = arith.constant 0 : index
    %c0_26 = arith.constant 0 : index
    %80 = vector.load %arg4[%c0_25, %c0_26] : memref<8x128xf32, #tpu.memory_space<vmem>>, vector<8x128xf32>
    tpu.vector_store %arg4[%c0_25, %c0_26], %79 {strides = array<i32>} : memref<8x128xf32, #tpu.memory_space<vmem>>, vector<8x128xf32>,
    return
  }
  func.func @transform_0(%arg0: i32) -> (i32, i32) {
    %c0_i32 = arith.constant 0 : i32
    %c0_i32_0 = arith.constant 0 : i32
    return %arg0, %c0_i32 : i32, i32
  }
  func.func @transform_1(%arg0: i32) -> (i32, i32) {
    %c0_i32 = arith.constant 0 : i32
    %c0_i32_0 = arith.constant 0 : i32
    %c0_i32_1 = arith.constant 0 : i32
    return %c0_i32, %c0_i32_0 : i32, i32
  }
  func.func @transform_2(%arg0: i32) -> (i32, i32) {
    %c0_i32 = arith.constant 0 : i32
    %c0_i32_0 = arith.constant 0 : i32
    %c0_i32_1 = arith.constant 0 : i32
    return %c0_i32, %c0_i32_0 : i32, i32
  }
  func.func @transform_3(%arg0: i32) -> (i32, i32) {
    %c0_i32 = arith.constant 0 : i32
    %c0_i32_0 = arith.constant 0 : i32
    return %arg0, %c0_i32 : i32, i32
  }
}

</mosaic_0001>

<bundles_post_ra>
// kernel: tpu_custom_call.1
= control target key start
LH: loop header
LB: loop body
LE: loop exit
PB: predicated region body
PF: predicated region fallthrough
CT: control target
= control target key end

     0   :  { %8 = vsyncpa [#allocation3], 0  ;;  %s1381_s0 = inlined_call_operand.hbm [shape: f32[8,128], index: 0, kind: input, shape index: {}]   ;;  %s1382_s1 = inlined_call_operand.hbm [shape: bf16[640,128], index: 1, kind: input, shape index: {}]   ;;  %s1383_s2 = inlined_call_operand.hbm [shape: f32[8,128], index: 2, kind: input, shape index: {}]   ;;  %s1384_s3 = inlined_call_operand.hbm [shape: f32[8,128], index: 3, kind: output, shape index: {}]  }
   0x1   :  { %9 = vsyncpa [#allocation6], 0 }
   0x2   :  { %10 = vsyncpa [#allocation4], 0  ;;  %s1191_s12 = smov [#allocation5]  }
   0x3   :  { %s26_s13 = sshll.u32 %s1191_s12, 4  ;;  %s27_s13 = int_to_ptr.vmem [resolvable:$true] %s26_s13 }
   0x4   :  { %s1113_s14 = scalar_lea.vmem %s27_s13, 5120  ;;  %p1118_p1 = scmp.lt.s32.totalorder %s27_s13, %s27_s13 }
   0x5   :  { %p1114_p0 = scmp.ne.s32.totalorder %s27_s13, %s1113_s14  ;;  %p1119_p2 = scmp.lt.s32.totalorder %s1113_s14, %s1113_s14 }
   0x7   :  { %p1120_p3 = por %p1119_p2, %p1118_p1 }
   0x9   :  { %p1121_p4 = pnand %p1120_p3, %p1114_p0 }
   0xb   :  { %1124 = shalt.err (!%p1121_p4)
}
   0xc   :  { %s1192_s15 = smov 64   ;;  %s1193_s16 = smov 4  }
   0xd   :  { %32 = dma.hbm_to_vmem [thread:$0]  %s1382_s1, 5120, %s27_s13, [#allocation6], %s1192_s15, %s1192_s15, %s1193_s16  }
   0xe   :  { %s1194_s19 = smov [#allocation2]   ;;  %s1195_s21 = smov [#allocation7]  }
   0xf   :  { %s17_s20 = sshll.u32 %s1194_s19, 4  ;;  %s39_s22 = sshll.u32 %s1195_s21, 4  ;;  %s18_s20 = int_to_ptr.vmem [resolvable:$true] %s17_s20  ;;  %s40_s22 = int_to_ptr.vmem [resolvable:$true] %s39_s22 }
  0x10   :  { %s1133_s23 = scalar_lea.vmem %s18_s20, 128  ;;  %p1138_p6 = scmp.lt.s32.totalorder %s18_s20, %s18_s20 }
  0x11   :  { %p1134_p5 = scmp.ne.s32.totalorder %s18_s20, %s1133_s23  ;;  %p1139_p7 = scmp.lt.s32.totalorder %s1133_s23, %s1133_s23 }
  0x13   :  { %p1140_p8 = por %p1139_p7, %p1138_p6 }
  0x15   :  { %p1141_p9 = pnand %p1140_p8, %p1134_p5 }
  0x17   :  { %1144 = shalt.err (!%p1141_p9)
}
  0x18   :  { %20 = dma.hbm_to_vmem [thread:$0]  %s1381_s0, 128, %s18_s20, [#allocation3]  }
  0x19   :  { %s1153_s26 = scalar_lea.vmem %s40_s22, 128  ;;  %p1158_p11 = scmp.lt.s32.totalorder %s40_s22, %s40_s22 }
  0x1a   :  { %p1154_p10 = scmp.ne.s32.totalorder %s40_s22, %s1153_s26  ;;  %p1159_p12 = scmp.lt.s32.totalorder %s1153_s26, %s1153_s26 }
  0x1c   :  { %p1160_p13 = por %p1159_p12, %p1158_p11 }
  0x1e   :  { %p1161_p0 = pnand %p1160_p13, %p1154_p10 }
  0x20   :  { %1164 = shalt.err (!%p1161_p0)
}
  0x21   :  { %42 = dma.hbm_to_vmem [thread:$0]  %s1383_s2, 128, %s40_s22, [#allocation6]  }
  0x22   :  { %1185 = dma.done.wait [#allocation3], 128  }
  0x23   :  { %1186 = vsyncadd [#allocation3], 4294967168 }
  0x24   :  { %1187 = dma.done.wait [#allocation6], 5248  }
  0x25   :  { %1188 = vsyncadd [#allocation6], 4294962048  ;;  %v1196_v0 = vmov 0.0   ;;  %vm1197_vm0 = vmmov 0   ;;  %v1059_v1 = vld [vmem:[#allocation5 + $0x38] sm:$0xff]   ;;  %v1060_v2 = vld [vmem:[#allocation5 + $0x30] sm:$0xff]   ;;  %v136_v19 = vlaneseq }
  0x26   :  { %891 = vmatprep.subr.bf16.mxu0 %v1196_v0  ;;  %907 = vmatprep.mubr.msk.bf16.mxu0 %vm1197_vm0, %v1196_v0  ;;  %v1061_v3 = vld [vmem:[#allocation5 + $0x28] sm:$0xff]   ;;  %v1236_v4 = vld [vmem:[#allocation5 + $0x138] sm:$0xff]   ;;  %v1062_v5 = vld [vmem:[#allocation5 + $0x20] sm:$0xff]   ;;  %s1198_s0 = smov [#allocation8]  }
  0x27   :  { %911 = vmatprep.subr.bf16.mxu1 %v1196_v0  ;;  %927 = vmatprep.mubr.msk.bf16.mxu1 %vm1197_vm0, %v1196_v0  ;;  %v1240_v6 = vld [vmem:[#allocation5 + $0x130] sm:$0xff]   ;;  %v1063_v7 = vld [vmem:[#allocation5 + $0x18] sm:$0xff]   ;;  %v1243_v8 = vld [vmem:[#allocation5 + $0x128] sm:$0xff]   ;;  %v1293_v20 = vshrl.u32 %v136_v19, 7  ;;  %s769_s2 = sshll.u32 %s1198_s0, 4  ;;  %s770_s2 = int_to_ptr.vmem [resolvable:$true] %s769_s2 }
  0x28   :  { %892 = vmatpush3.bf16.msra.mxu0 %v1059_v1  ;;  %912 = vmatpush3.bf16.msra.mxu1 %v1236_v4  ;;  %v1064_v9 = vld [vmem:[#allocation5 + $0x10] sm:$0xff]   ;;  %v1248_v10 = vld [vmem:[#allocation5 + $0x120] sm:$0xff]   ;;  %v1065_v11 = vld [vmem:[#allocation5 + $0x8] sm:$0xff]   ;;  %s1165_s28 = scalar_lea.vmem %s770_s2, 128  ;;  %p1170_p2 = scmp.lt.s32.totalorder %s770_s2, %s770_s2 }
  0x29   :  { %893 = vmatprep.subr.bf16.mxu0 %v1196_v0  ;;  %913 = vmatprep.subr.bf16.mxu1 %v1196_v0  ;;  %v1253_v12 = vld [vmem:[#allocation5 + $0x118] sm:$0xff]   ;;  %v1066_v13 = vld [vmem:[#allocation5] sm:$0xff]   ;;  %v1258_v15 = vld [vmem:[#allocation5 + $0x110] sm:$0xff]   ;;  %v138_v21 = vsub.s32 0, %v1293_v20  ;;  %v368_v53 = vsub.s32 1, %v1293_v20  ;;  %v373_v54 = vsub.s32 2, %v1293_v20  ;;  %p1166_p1 = scmp.ne.s32.totalorder %s770_s2, %s1165_s28  ;;  %p1171_p3 = scmp.lt.s32.totalorder %s1165_s28, %s1165_s28 }
  0x2a   :  { %v53_v14 = vld [vmem:[#allocation2] sm:$0xff]  ;;  %v1280_v17 = vld [vmem:[#allocation5 + $0x108] sm:$0xff]   ;;  %v1286_v18 = vld [vmem:[#allocation5 + $0x100] sm:$0xff]   ;;  %v379_v62 = vsub.s32 3, %v1293_v20 }
  0x2b   :  { %v135_v16 = vpack.c.bf16 %v53_v14, %v53_v14  ;;  %v1296_v22 = vld [vmem:[#allocation7] sm:$0xff]  ;;  %v1075_v31 = vld [vmem:[#allocation5 + $0x78] sm:$0xff]   ;;  %v1076_v40 = vld [vmem:[#allocation5 + $0x70] sm:$0xff]   ;;  %p1172_p4 = por %p1171_p3, %p1170_p2 }
  0x2c   :  { %894 = vmatpush3.bf16.msra.mxu0 %v1060_v2  ;;  %914 = vmatpush3.bf16.msra.mxu1 %v1240_v6  ;;  %v139_v23 = vrot.slane %v1296_v22, %v138_v21  ;;  %v1077_v41 = vld [vmem:[#allocation5 + $0x68] sm:$0xff]   ;;  %v1078_v42 = vld [vmem:[#allocation5 + $0x60] sm:$0xff]   ;;  %v1079_v43 = vld [vmem:[#allocation5 + $0x58] sm:$0xff]   ;;  %v369_v55 = vrot.slane %v1296_v22, %v368_v53  ;;  %v374_v58 = vrot.slane %v1296_v22, %v373_v54 }
  0x2d   :  { %895 = vmatprep.subr.bf16.mxu0 %v1196_v0  ;;  %915 = vmatprep.subr.bf16.mxu1 %v1196_v0  ;;  %v1080_v44 = vld [vmem:[#allocation5 + $0x50] sm:$0xff]   ;;  %v1081_v45 = vld [vmem:[#allocation5 + $0x48] sm:$0xff]   ;;  %v1082_v46 = vld [vmem:[#allocation5 + $0x40] sm:$0xff]   ;;  %v380_v63 = vrot.slane %v1296_v22, %v379_v62  ;;  %p1173_p5 = pnand %p1172_p4, %p1166_p1 }
  0x2e   :  { %v1086_v21 = vld [vmem:[#allocation5 + $0xa0] sm:$0xff]  }
  0x30   :  { %896 = vmatpush3.bf16.msra.mxu0 %v1061_v3  ;;  %916 = vmatpush3.bf16.msra.mxu1 %v1243_v8 }
  0x31   :  { %897 = vmatprep.subr.bf16.mxu0 %v1196_v0  ;;  %917 = vmatprep.subr.bf16.mxu1 %v1196_v0 }
  0x34   :  { %898 = vmatpush3.bf16.msra.mxu0 %v1062_v5  ;;  %918 = vmatpush3.bf16.msra.mxu1 %v1248_v10 }
  0x35   :  { %899 = vmatprep.subr.bf16.mxu0 %v1196_v0  ;;  %919 = vmatprep.subr.bf16.mxu1 %v1196_v0 }
  0x38   :  { %900 = vmatpush3.bf16.msra.mxu0 %v1063_v7  ;;  %920 = vmatpush3.bf16.msra.mxu1 %v1253_v12 }
  0x39   :  { %901 = vmatprep.subr.bf16.mxu0 %v1196_v0  ;;  %921 = vmatprep.subr.bf16.mxu1 %v1196_v0 }
  0x3c   :  { %902 = vmatpush3.bf16.msra.mxu0 %v1064_v9  ;;  %922 = vmatpush3.bf16.msra.mxu1 %v1258_v15 }
  0x3d   :  { %903 = vmatprep.subr.bf16.mxu0 %v1196_v0  ;;  %923 = vmatprep.subr.bf16.mxu1 %v1196_v0 }
  0x40   :  { %904 = vmatpush3.bf16.msra.mxu0 %v1065_v11  ;;  %924 = vmatpush3.bf16.msra.mxu1 %v1280_v17 }
  0x41   :  { %905 = vmatprep.subr.bf16.mxu0 %v1196_v0  ;;  %925 = vmatprep.subr.bf16.mxu1 %v1196_v0 }
  0x44   :  { %906 = vmatpush3.bf16.msra.mxu0 %v1066_v13  ;;  %926 = vmatpush3.bf16.msra.mxu1 %v1286_v18 }
  0x45   :  { %931 = vmatprep.subr.bf16.mxu0 %v1196_v0  ;;  %951 = vmatprep.subr.bf16.mxu1 %v1196_v0 }
  0x47   :  { %908 = vmatmul.mubr.bf16.vlgmr.msra.gmra.mxu0 %v135_v16 }
  0x48   :  { %932 = vmatpush3.bf16.msra.mxu0 %v1236_v4  ;;  %947 = vmatprep.mubr.msk.bf16.mxu0 %vm1197_vm0, %v1196_v0 }
  0x49   :  { %933 = vmatprep.subr.bf16.mxu0 %v1196_v0 }
  0x4c   :  { %934 = vmatpush3.bf16.msra.mxu0 %v1240_v6 }
  0x4d   :  { %935 = vmatprep.subr.bf16.mxu0 %v1196_v0 }
  0x50   :  { %936 = vmatpush3.bf16.msra.mxu0 %v1243_v8 }
  0x51   :  { %937 = vmatprep.subr.bf16.mxu0 %v1196_v0 }
  0x54   :  { %938 = vmatpush3.bf16.msra.mxu0 %v1248_v10 }
  0x55   :  { %939 = vmatprep.subr.bf16.mxu0 %v1196_v0 }
  0x58   :  { %940 = vmatpush3.bf16.msra.mxu0 %v1253_v12 }
  0x59   :  { %941 = vmatprep.subr.bf16.mxu0 %v1196_v0 }
  0x5c   :  { %942 = vmatpush3.bf16.msra.mxu0 %v1258_v15 }
  0x5d   :  { %943 = vmatprep.subr.bf16.mxu0 %v1196_v0 }
  0x60   :  { %944 = vmatpush3.bf16.msra.mxu0 %v1280_v17 }
  0x61   :  { %945 = vmatprep.subr.bf16.mxu0 %v1196_v0 }
  0x64   :  { %946 = vmatpush3.bf16.msra.mxu0 %v1286_v18 }
  0x65   :  { %971 = vmatprep.subr.bf16.mxu0 %v1196_v0 }
 0x107   :  { %v222_v24 = vpop.f32.mrf.mxu0 }
 0x108   :  { %v223_v25 = vadd.f32 %v222_v24, %v139_v23  ;;  %v1087_v23 = vld [vmem:[#allocation5 + $0x98] sm:$0xff]   ;;  %v1088_v24 = vld [vmem:[#allocation5 + $0x90] sm:$0xff]  }
 0x109   :  { %v909_v26 = vpop.f32.mrf.mxu0 }
 0x10a   :  { %v228_v27 = vmax.f32 %v223_v25, 0.0  ;;  %v1089_v25 = vld [vmem:[#allocation5 + $0x88] sm:$0xff]   ;;  %v1090_v26 = vld [vmem:[#allocation5 + $0x80] sm:$0xff]  }
 0x10b   :  { %v225_v28 = vpop.f32.mrf.mxu0 }
 0x10c   :  { %v229_v29 = vpack.c.bf16 %v228_v27, %v228_v27  ;;  %v1092_v28 = vld [vmem:[#allocation5 + $0xf0] sm:$0xff]  }
 0x10d   :  { %v910_v30 = vpop.f32.mrf.mxu0 }
 0x10e   :  { %928 = vmatmul.mubr.bf16.vlgmr.msra.gmra.mxu1 %v229_v29  ;;  %v1093_v29 = vld [vmem:[#allocation5 + $0xe8] sm:$0xff]   ;;  %v1094_v30 = vld [vmem:[#allocation5 + $0xe0] sm:$0xff]  }
 0x10f   :  { %967 = vmatprep.mubr.msk.bf16.mxu1 %vm1197_vm0, %v1196_v0  ;;  %952 = vmatpush3.bf16.msra.mxu1 %v1075_v31  ;;  %v1095_v31 = vld [vmem:[#allocation5 + $0xd8] sm:$0xff]  }
 0x110   :  { %953 = vmatprep.subr.bf16.mxu1 %v1196_v0 }
 0x113   :  { %954 = vmatpush3.bf16.msra.mxu1 %v1076_v40  ;;  %v566_v40 = vsub.s32 5, %v1293_v20 }
 0x114   :  { %955 = vmatprep.subr.bf16.mxu1 %v1196_v0 }
 0x117   :  { %956 = vmatpush3.bf16.msra.mxu1 %v1077_v41 }
 0x118   :  { %957 = vmatprep.subr.bf16.mxu1 %v1196_v0 }
 0x11b   :  { %958 = vmatpush3.bf16.msra.mxu1 %v1078_v42 }
 0x11c   :  { %959 = vmatprep.subr.bf16.mxu1 %v1196_v0 }
 0x11f   :  { %960 = vmatpush3.bf16.msra.mxu1 %v1079_v43 }
 0x120   :  { %961 = vmatprep.subr.bf16.mxu1 %v1196_v0 }
 0x123   :  { %962 = vmatpush3.bf16.msra.mxu1 %v1080_v44  ;;  %v567_v44 = vrot.slane %v1296_v22, %v566_v40 }
 0x124   :  { %963 = vmatprep.subr.bf16.mxu1 %v1196_v0 }
 0x127   :  { %964 = vmatpush3.bf16.msra.mxu1 %v1081_v45 }
 0x128   :  { %965 = vmatprep.subr.bf16.mxu1 %v1196_v0 }
 0x12b   :  { %966 = vmatpush3.bf16.msra.mxu1 %v1082_v46 }
 0x12c   :  { %991 = vmatprep.subr.bf16.mxu1 %v1196_v0 }
 0x1ce   :  { %v312_v32 = vpop.f32.mrf.mxu1 }
 0x1cf   :  { %v318_v33 = vmul.f32 0.03125, %v312_v32  ;;  %v1096_v32 = vld [vmem:[#allocation5 + $0xd0] sm:$0xff]  }
 0x1d0   :  { %v929_v34 = vpop.f32.mrf.mxu1 }
 0x1d1   :  { %v319_v35 = vsub.f32 %v228_v27, %v318_v33  ;;  %v1091_v27 = vld [vmem:[#allocation5 + $0xf8] sm:$0xff]  }
 0x1d2   :  { %v315_v36 = vpop.f32.mrf.mxu1 }
 0x1d3   :  { %v320_v37 = vmul.f32 %v319_v35, %v319_v35 }
 0x1d4   :  { %v930_v38 = vpop.f32.mrf.mxu1 }
 0x1d5   :  { %v321_v39 = vpack.c.bf16 %v320_v37, %v320_v37 }
 0x1d7   :  { %948 = vmatmul.mubr.bf16.vlgmr.msra.gmra.mxu0 %v321_v39  ;;  %v561_v39 = vsub.s32 4, %v1293_v20 }
 0x1d8   :  { %972 = vmatpush3.bf16.msra.mxu0 %v1236_v4  ;;  %987 = vmatprep.mubr.msk.bf16.mxu0 %vm1197_vm0, %v1196_v0 }
 0x1d9   :  { %973 = vmatprep.subr.bf16.mxu0 %v1196_v0  ;;  %v562_v41 = vrot.slane %v1296_v22, %v561_v39 }
 0x1dc   :  { %974 = vmatpush3.bf16.msra.mxu0 %v1240_v6 }
 0x1dd   :  { %975 = vmatprep.subr.bf16.mxu0 %v1196_v0 }
 0x1e0   :  { %976 = vmatpush3.bf16.msra.mxu0 %v1243_v8 }
 0x1e1   :  { %977 = vmatprep.subr.bf16.mxu0 %v1196_v0 }
 0x1e4   :  { %978 = vmatpush3.bf16.msra.mxu0 %v1248_v10 }
 0x1e5   :  { %979 = vmatprep.subr.bf16.mxu0 %v1196_v0 }
 0x1e8   :  { %980 = vmatpush3.bf16.msra.mxu0 %v1253_v12 }
 0x1e9   :  { %981 = vmatprep.subr.bf16.mxu0 %v1196_v0 }
 0x1ec   :  { %982 = vmatpush3.bf16.msra.mxu0 %v1258_v15 }
 0x1ed   :  { %983 = vmatprep.subr.bf16.mxu0 %v1196_v0 }
 0x1f0   :  { %984 = vmatpush3.bf16.msra.mxu0 %v1280_v17 }
 0x1f1   :  { %985 = vmatprep.subr.bf16.mxu0 %v1196_v0 }
 0x1f4   :  { %986 = vmatpush3.bf16.msra.mxu0 %v1286_v18 }
 0x1f5   :  { %1011 = vmatprep.subr.bf16.mxu0 %v1196_v0 }
 0x297   :  { %v356_v47 = vpop.f32.mrf.mxu0 }
 0x298   :  { %v362_v48 = vmul.f32 0.03125, %v356_v47 }
 0x299   :  { %v949_v49 = vpop.f32.mrf.mxu0 }
 0x29a   :  { %v363_v50 = vadd.f32 1e-05, %v362_v48  ;;  %v1097_v48 = vld [vmem:[#allocation5 + $0xc8] sm:$0xff]   ;;  %v1098_v49 = vld [vmem:[#allocation5 + $0xc0] sm:$0xff]  }
 0x29b   :  { %v359_v51 = vpop.f32.mrf.mxu0 }
 0x29c   :  { %1099 = vrsqrt.f32 %v363_v50  ;;  %v572_v50 = vsub.s32 6, %v1293_v20 }
 0x29d   :  { %v950_v52 = vpop.f32.mrf.mxu0 }
 0x29e   :  { %v573_v51 = vrot.slane %v1296_v22, %v572_v50 }
 0x2a9   :  { %v1100_v56 = vpop.eup %1099 }
 0x2aa   :  { %v365_v57 = vmul.f32 %v1100_v56, %v319_v35 }
 0x2ac   :  { %v370_v59 = vmul.f32 %v369_v55, %v365_v57 }
 0x2ae   :  { %v375_v60 = vadd.f32 %v374_v58, %v370_v59  ;;  %v666_v59 = vsub.s32 7, %v1293_v20 }
 0x2b0   :  { %v376_v61 = vpack.c.bf16 %v375_v60, %v375_v60  ;;  %v667_v60 = vrot.slane %v1296_v22, %v666_v59 }
 0x2b2   :  { %968 = vmatmul.mubr.bf16.vlgmr.msra.gmra.mxu1 %v376_v61 }
 0x2b3   :  { %992 = vmatpush3.bf16.msra.mxu1 %v1236_v4  ;;  %1007 = vmatprep.mubr.msk.bf16.mxu1 %vm1197_vm0, %v1196_v0 }
 0x2b4   :  { %993 = vmatprep.subr.bf16.mxu1 %v1196_v0 }
 0x2b7   :  { %994 = vmatpush3.bf16.msra.mxu1 %v1240_v6 }
 0x2b8   :  { %995 = vmatprep.subr.bf16.mxu1 %v1196_v0 }
 0x2bb   :  { %996 = vmatpush3.bf16.msra.mxu1 %v1243_v8  ;;  %v1083_v8 = vld [vmem:[#allocation5 + $0xb8] sm:$0xff]  }
 0x2bc   :  { %997 = vmatprep.subr.bf16.mxu1 %v1196_v0 }
 0x2bf   :  { %998 = vmatpush3.bf16.msra.mxu1 %v1248_v10 }
 0x2c0   :  { %999 = vmatprep.subr.bf16.mxu1 %v1196_v0 }
 0x2c3   :  { %1000 = vmatpush3.bf16.msra.mxu1 %v1253_v12 }
 0x2c4   :  { %1001 = vmatprep.subr.bf16.mxu1 %v1196_v0 }
 0x2c7   :  { %1002 = vmatpush3.bf16.msra.mxu1 %v1258_v15 }
 0x2c8   :  { %1003 = vmatprep.subr.bf16.mxu1 %v1196_v0 }
 0x2cb   :  { %1004 = vmatpush3.bf16.msra.mxu1 %v1280_v17  ;;  %v1084_v17 = vld [vmem:[#allocation5 + $0xb0] sm:$0xff]  }
 0x2cc   :  { %1005 = vmatprep.subr.bf16.mxu1 %v1196_v0 }
 0x2cf   :  { %1006 = vmatpush3.bf16.msra.mxu1 %v1286_v18  ;;  %v1085_v18 = vld [vmem:[#allocation5 + $0xa8] sm:$0xff]  }
 0x2d0   :  { %1031 = vmatprep.subr.bf16.mxu1 %v1196_v0 }
 0x372   :  { %v463_v1 = vpop.f32.mrf.mxu1 }
 0x373   :  { %v464_v2 = vadd.f32 %v463_v1, %v380_v63 }
 0x374   :  { %v969_v3 = vpop.f32.mrf.mxu1 }
 0x375   :  { %v469_v4 = vmax.f32 %v464_v2, 0.0  ;;  %v757_v2 = vand.u32 127, %v136_v19 }
 0x376   :  { %v466_v5 = vpop.f32.mrf.mxu1 }
 0x377   :  { %v470_v6 = vpack.c.bf16 %v469_v4, %v469_v4  ;;  %v758_v3 = vand.u32 31, %v757_v2 }
 0x378   :  { %v970_v7 = vpop.f32.mrf.mxu1 }
 0x379   :  { %988 = vmatmul.mubr.bf16.vlgmr.msra.gmra.mxu0 %v470_v6  ;;  %vm759_vm1 = vcmp.lt.s32.totalorder %v758_v3, 16 }
 0x37a   :  { %1027 = vmatprep.mubr.msk.bf16.mxu0 %vm1197_vm0, %v1196_v0  ;;  %1012 = vmatpush3.bf16.msra.mxu0 %v1083_v8 }
 0x37b   :  { %1013 = vmatprep.subr.bf16.mxu0 %v1196_v0 }
 0x37e   :  { %1014 = vmatpush3.bf16.msra.mxu0 %v1084_v17 }
 0x37f   :  { %1015 = vmatprep.subr.bf16.mxu0 %v1196_v0 }
 0x382   :  { %1016 = vmatpush3.bf16.msra.mxu0 %v1085_v18 }
 0x383   :  { %1017 = vmatprep.subr.bf16.mxu0 %v1196_v0 }
 0x386   :  { %1018 = vmatpush3.bf16.msra.mxu0 %v1086_v21 }
 0x387   :  { %1019 = vmatprep.subr.bf16.mxu0 %v1196_v0 }
 0x38a   :  { %1020 = vmatpush3.bf16.msra.mxu0 %v1087_v23 }
 0x38b   :  { %1021 = vmatprep.subr.bf16.mxu0 %v1196_v0 }
 0x38e   :  { %1022 = vmatpush3.bf16.msra.mxu0 %v1088_v24 }
 0x38f   :  { %1023 = vmatprep.subr.bf16.mxu0 %v1196_v0 }
 0x392   :  { %1024 = vmatpush3.bf16.msra.mxu0 %v1089_v25 }
 0x393   :  { %1025 = vmatprep.subr.bf16.mxu0 %v1196_v0 }
 0x396   :  { %1026 = vmatpush3.bf16.msra.mxu0 %v1090_v26 }
 0x439   :  { %v505_v9 = vpop.f32.mrf.mxu0 }
 0x43a   :  { %v511_v10 = vmul.f32 0.03125, %v505_v9 }
 0x43b   :  { %v989_v11 = vpop.f32.mrf.mxu0 }
 0x43c   :  { %v512_v12 = vsub.f32 %v469_v4, %v511_v10 }
 0x43d   :  { %v508_v13 = vpop.f32.mrf.mxu0 }
 0x43e   :  { %v513_v14 = vmul.f32 %v512_v12, %v512_v12 }
 0x43f   :  { %v990_v15 = vpop.f32.mrf.mxu0 }
 0x440   :  { %v514_v16 = vpack.c.bf16 %v513_v14, %v513_v14 }
 0x442   :  { %1008 = vmatmul.mubr.bf16.vlgmr.msra.gmra.mxu1 %v514_v16 }
 0x443   :  { %1047 = vmatprep.mubr.msk.bf16.mxu1 %vm1197_vm0, %v1196_v0  ;;  %1032 = vmatpush3.bf16.msra.mxu1 %v1091_v27 }
 0x444   :  { %1033 = vmatprep.subr.bf16.mxu1 %v1196_v0 }
 0x447   :  { %1034 = vmatpush3.bf16.msra.mxu1 %v1092_v28 }
 0x448   :  { %1035 = vmatprep.subr.bf16.mxu1 %v1196_v0 }
 0x44b   :  { %1036 = vmatpush3.bf16.msra.mxu1 %v1093_v29 }
 0x44c   :  { %1037 = vmatprep.subr.bf16.mxu1 %v1196_v0 }
 0x44f   :  { %1038 = vmatpush3.bf16.msra.mxu1 %v1094_v30 }
 0x450   :  { %1039 = vmatprep.subr.bf16.mxu1 %v1196_v0 }
 0x453   :  { %1040 = vmatpush3.bf16.msra.mxu1 %v1095_v31 }
 0x454   :  { %1041 = vmatprep.subr.bf16.mxu1 %v1196_v0 }
 0x457   :  { %1042 = vmatpush3.bf16.msra.mxu1 %v1096_v32 }
 0x458   :  { %1043 = vmatprep.subr.bf16.mxu1 %v1196_v0 }
 0x45b   :  { %1044 = vmatpush3.bf16.msra.mxu1 %v1097_v48 }
 0x45c   :  { %1045 = vmatprep.subr.bf16.mxu1 %v1196_v0 }
 0x45f   :  { %1046 = vmatpush3.bf16.msra.mxu1 %v1098_v49 }
 0x502   :  { %v549_v33 = vpop.f32.mrf.mxu1 }
 0x503   :  { %v555_v34 = vmul.f32 0.03125, %v549_v33 }
 0x504   :  { %v1009_v35 = vpop.f32.mrf.mxu1 }
 0x505   :  { %v556_v36 = vadd.f32 1e-05, %v555_v34 }
 0x506   :  { %v552_v37 = vpop.f32.mrf.mxu1 }
 0x507   :  { %1101 = vrsqrt.f32 %v556_v36 }
 0x508   :  { %v1010_v38 = vpop.f32.mrf.mxu1 }
 0x514   :  { %v1102_v42 = vpop.eup %1101 }
 0x515   :  { %v558_v43 = vmul.f32 %v1102_v42, %v512_v12 }
 0x517   :  { %v563_v45 = vmul.f32 %v562_v41, %v558_v43 }
 0x519   :  { %v568_v46 = vadd.f32 %v567_v44, %v563_v45 }
 0x51b   :  { %v569_v47 = vpack.c.bf16 %v568_v46, %v568_v46 }
 0x51d   :  { %1028 = vmatmul.mubr.bf16.vlgmr.msra.gmra.mxu0 %v569_v47 }
 0x5dd   :  { %v656_v52 = vpop.f32.mrf.mxu0 }
 0x5de   :  { %v657_v53 = vadd.f32 %v656_v52, %v573_v51 }
 0x5df   :  { %v1029_v54 = vpop.f32.mrf.mxu0 }
 0x5e0   :  { %v662_v55 = vmax.f32 %v657_v53, 0.0 }
 0x5e1   :  { %v659_v56 = vpop.f32.mrf.mxu0 }
 0x5e2   :  { %v663_v57 = vpack.c.bf16 %v662_v55, %v662_v55 }
 0x5e3   :  { %v1030_v58 = vpop.f32.mrf.mxu0 }
 0x5e4   :  { %1048 = vmatmul.mubr.bf16.vlgmr.msra.gmra.mxu1 %v663_v57 }
 0x6a4   :  { %v750_v61 = vpop.f32.mrf.mxu1 }
 0x6a5   :  { %v751_v0 = vadd.f32 %v750_v61, %v667_v60 }
 0x6a6   :  { %v1049_v62 = vpop.f32.mrf.mxu1 }
 0x6a7   :  { %1103 = vtanh.f32 %v751_v0 }
 0x6a8   :  { %v753_v63 = vpop.f32.mrf.mxu1 }
 0x6aa   :  { %v1050_v1 = vpop.f32.mrf.mxu1 }
 0x6b4   :  { %v1104_v4 = vpop.eup %1103 }
 0x6b5   :  { %v761_v5 = vsel %vm759_vm1, %v1104_v4, %v751_v0 }
 0x6b6   :  { %762 = vst [vmem:[#allocation8] sm:$0xff] %v761_v5 }
 0x6b7   :  { %1176 = shalt.err (!%p1173_p5)
}
 0x6b8   :  { %772 = dma.vmem_to_hbm [thread:$0]  %s770_s2, 128, %s1384_s3, [#allocation4]  }
 0x6b9   :  { %1189 = dma.done.wait [#allocation4], 128  }
 0x6ba   :  { %1190 = vsyncadd [#allocation4], 4294967168 }
 0x6bb   :  { %776 = vsyncpa [#allocation3], 1 }
 0x6bc   :  { %777 = vsyncpa [#allocation6], 1 }
 0x6bd   :  { %778 = vsyncpa [#allocation4], 1 }

</bundles_post_ra>
